<compile_context>
chip_gen: v6e
topology: v6e:2x2x1
jax: 0.10.0
libtpu: 0.0.40
codegen_flags: <defaults>
</compile_context>

<pallas_src>
import functools

import jax
import jax.numpy as jnp
from jax.experimental import pallas as pl
from jax.experimental.pallas import tpu as pltpu


def cbow_kernel(x_ref, w1_ref, b1_ref, w2_ref, b2_ref, *rest, needs_mask):
    if needs_mask:
        mask_ref, out_ref = rest
    else:
        (out_ref,) = rest

    # linear1 + relu : (BM, D) @ (D, H), bf16 operands, f32 accumulation.
    h = jnp.dot(x_ref[...], w1_ref[...], preferred_element_type=jnp.float32)
    h = jnp.maximum(h + b1_ref[...], 0.0)              # f32 elementwise

    # linear2 + relu : (BM, H) @ (H, V_pad), bf16 operands, f32 accumulation.
    y = jnp.dot(h.astype(w2_ref.dtype), w2_ref[...],
                preferred_element_type=jnp.float32)
    y = jnp.maximum(y + b2_ref[...], 0.0)              # relu on logits (matches module)

    if needs_mask:
        # Precomputed additive mask: 0 on valid vocab lanes, -1e30 on padding,
        # applied AFTER relu and BEFORE logsumexp so the distribution is unchanged.
        y = y + mask_ref[...]

    # log_softmax over the vocab axis (f32 throughout).
    m = jnp.max(y, axis=1, keepdims=True)
    lse = m + jnp.log(jnp.sum(jnp.exp(y - m), axis=1, keepdims=True))
    out_ref[...] = y - lse


def cbow_forward(indices, emb, w1, b1, w2, b2, *, block_m=128,
                 matmul_dtype=jnp.bfloat16):
    """indices: (B, ctx) int32; emb: (V, D); w1: (D, H); b1: (1, H);
    w2: (H, V); b2: (1, V).  Returns (B, V) log-probabilities (float32).

    Weight layout is (in_features, out_features): x @ W + b, equivalent to
    PyTorch's x @ W.T + b with W of shape (out, in)."""
    if indices.ndim == 1:
        indices = indices[None, :]
    B = indices.shape[0]
    V, D = emb.shape
    H = w1.shape[1]

    # Use 128 rows per tile (256 on v6e/v7x at real batch sizes); for small
    # problems clamp so the whole batch is a single grid step (the demo is
    # per-step-overhead bound, not slot bound). Keep a multiple of 8 sublanes.
    block_m = max(8, (min(block_m, pl.cdiv(B, 8) * 8) // 8) * 8)

    # Embedding gather + context sum in XLA: efficient gather, keeps the (V, D)
    # table out of VMEM, and the Pallas kernel starts on the MXU immediately.
    x = jnp.sum(emb[indices].astype(jnp.float32), axis=1)            # (B, D)

    # Pad batch to the row tile and vocab to a multiple of 128 lanes so the
    # output store is lane-dense (unmasked vst).
    b_pad = pl.cdiv(B, block_m) * block_m
    v_pad = pl.cdiv(V, 128) * 128
    needs_mask = (v_pad != V)

    x = jnp.pad(x, ((0, b_pad - B), (0, 0))).astype(matmul_dtype)
    w1c = w1.astype(matmul_dtype)
    b1c = b1.astype(jnp.float32)
    w2p = jnp.pad(w2, ((0, 0), (0, v_pad - V))).astype(matmul_dtype)
    b2p = jnp.pad(b2, ((0, 0), (0, v_pad - V))).astype(jnp.float32)

    mm_bytes = jnp.dtype(matmul_dtype).itemsize

    # Constant (index_map -> (0, 0)) operands are single-buffered: a second
    # pipeline buffer for them is pure VMEM waste.
    const1 = pl.Buffered(1)
    inputs = [x, w1c, b1c, w2p, b2p]
    in_specs = [
        pl.BlockSpec((block_m, D), lambda i: (i, 0)),                       # summed embeddings
        pl.BlockSpec((D, H), lambda i: (0, 0), pipeline_mode=const1),       # w1 (bf16)
        pl.BlockSpec((1, H), lambda i: (0, 0), pipeline_mode=const1),       # b1 (f32)
        pl.BlockSpec((H, v_pad), lambda i: (0, 0), pipeline_mode=const1),   # w2 (bf16, lane padded)
        pl.BlockSpec((1, v_pad), lambda i: (0, 0), pipeline_mode=const1),   # b2 (f32, lane padded)
    ]
    if needs_mask:
        mask = jnp.where(jnp.arange(v_pad) < V, 0.0, -1e30)
        mask = mask.astype(jnp.float32)[None, :]                            # (1, v_pad)
        inputs.append(mask)
        in_specs.append(
            pl.BlockSpec((1, v_pad), lambda i: (0, 0), pipeline_mode=const1))

    # Scoped-VMEM budget: actual tile footprint with ~2x headroom, never below
    # 16 MiB and never above 64 MiB (v7x physical VMEM).
    vmem_need = (
        2 * block_m * D * mm_bytes                       # x tile, double-buffered
        + D * H * mm_bytes + H * 4                       # w1 + b1, single-buffered
        + H * v_pad * mm_bytes + 2 * v_pad * 4           # w2 + b2 + mask
        + 2 * block_m * v_pad * 4                        # output tile, double-buffered
    )
    vmem_limit = int(min(max(2 * vmem_need, 16 * 1024 * 1024), 64 * 1024 * 1024))

    cost = pl.CostEstimate(
        flops=2 * b_pad * (D * H + H * v_pad),
        transcendentals=b_pad * (v_pad + 1),
        bytes_accessed=(mm_bytes * (b_pad * D + D * H + H * v_pad)
                        + 4 * (H + 2 * v_pad + b_pad * v_pad)),
    )

    kernel = functools.partial(cbow_kernel, needs_mask=needs_mask)
    out = pl.pallas_call(
        kernel,
        out_shape=jax.ShapeDtypeStruct((b_pad, v_pad), jnp.float32),
        grid_spec=pl.GridSpec(
            grid=(b_pad // block_m,),
            in_specs=in_specs,
            out_specs=pl.BlockSpec((block_m, v_pad), lambda i: (i, 0)),
        ),
        compiler_params=pltpu.CompilerParams(
            dimension_semantics=("parallel",),     # v7x: 2 TCs split the batch grid
            vmem_limit_bytes=vmem_limit,
        ),
        cost_estimate=cost,
    )(*inputs)

    # Padded batch rows / vocab lanes are sliced away; any future consumer of the
    # unsliced buffer (e.g. a fused loss) must re-apply the mask.
    return out[:B, :V]


def reference_forward(indices, emb, w1, b1, w2, b2, matmul_dtype=jnp.float32):
    """Pure-JAX reference with the same (optional) bf16 matmul casts."""
    x = jnp.sum(emb[indices].astype(jnp.float32), axis=1)
    h = jnp.dot(x.astype(matmul_dtype), w1.astype(matmul_dtype),
                preferred_element_type=jnp.float32) + b1
    h = jnp.maximum(h, 0.0)
    y = jnp.dot(h.astype(matmul_dtype), w2.astype(matmul_dtype),
                preferred_element_type=jnp.float32) + b2
    y = jnp.maximum(y, 0.0)
    return jax.nn.log_softmax(y, axis=1)


if __name__ == "__main__":
    raw_text = ('We are about to study the idea of a computational process.\n'
                'Computational processes are abstract beings that inhabit computers.\n'
                'As they evolve, processes manipulate other abstract things called data.\n'
                'The evolution of a process is directed by a pattern of rules\n'
                'called a program. People create programs to direct processes. In effect,\n'
                'we conjure the spirits of the computer with our spells.').split()
    vocab = sorted(set(raw_text))               # deterministic ordering
    word_to_ix = {w: i for i, w in enumerate(vocab)}

    vocab_size = len(vocab)                     # 49
    embedding_dim = 32
    context_size = 2
    hidden = 128

    key = jax.random.PRNGKey(0)
    k_emb, k_w1, k_b1, k_w2, k_b2 = jax.random.split(key, 5)

    # nn.Embedding default init: N(0, 1)
    emb = jax.random.normal(k_emb, (vocab_size, embedding_dim), jnp.float32)
    # nn.Linear default init: U(-1/sqrt(fan_in), 1/sqrt(fan_in)); stored as (in, out)
    lim1 = 1.0 / jnp.sqrt(embedding_dim)
    w1 = jax.random.uniform(k_w1, (embedding_dim, hidden), jnp.float32, -lim1, lim1)
    b1 = jax.random.uniform(k_b1, (1, hidden), jnp.float32, -lim1, lim1)
    lim2 = 1.0 / jnp.sqrt(hidden)
    w2 = jax.random.uniform(k_w2, (hidden, vocab_size), jnp.float32, -lim2, lim2)
    b2 = jax.random.uniform(k_b2, (1, vocab_size), jnp.float32, -lim2, lim2)

    # Build every CBOW context window from the text and batch them all into a
    # single pallas_call (B = 58 windows of 4 context words each).
    contexts = []
    for i in range(context_size, len(raw_text) - context_size):
        ctx_words = (raw_text[i - 2], raw_text[i - 1],
                     raw_text[i + 1], raw_text[i + 2])
        contexts.append([word_to_ix[w] for w in ctx_words])
    indices = jnp.array(contexts, dtype=jnp.int32)          # (B, 4)
    B = indices.shape[0]

    # block_m=128 gets clamped to b_pad=64, so the toy problem is ONE grid step.
    out = cbow_forward(indices, emb, w1, b1, w2, b2, block_m=128)
    out = jax.block_until_ready(out)

    # Primary check: against a pure-JAX reference with the SAME bf16 matmul
    # casts (tight tolerance).  Secondary: against the all-f32 reference with a
    # looser tolerance to bound the bf16 precision loss.
    ref_bf16 = reference_forward(indices, emb, w1, b1, w2, b2,
                                 matmul_dtype=jnp.bfloat16)
    ref_f32 = reference_forward(indices, emb, w1, b1, w2, b2,
                                matmul_dtype=jnp.float32)

    assert out.shape == (B, vocab_size)
    assert bool(jnp.all(jnp.isfinite(out))), "non-finite log-probs"
    assert jnp.allclose(out, ref_bf16, atol=1e-3, rtol=1e-3), \
        "mismatch vs same-precision reference"
    assert jnp.allclose(out, ref_f32, atol=1e-1, rtol=1e-1), \
        "bf16 precision drift vs f32 reference too large"

    print("KERNEL_OK")
</pallas_src>

<mosaic_0001>
module attributes {stable_mosaic.version = 11 : i64} {
  func.func @cbow_kernel(%arg0: i32, %arg1: memref<64x32xbf16, #tpu.memory_space<vmem>>, %arg2: memref<32x128xbf16, #tpu.memory_space<vmem>>, %arg3: memref<1x128xf32, #tpu.memory_space<vmem>>, %arg4: memref<128x128xbf16, #tpu.memory_space<vmem>>, %arg5: memref<1x128xf32, #tpu.memory_space<vmem>>, %arg6: memref<1x128xf32, #tpu.memory_space<vmem>>, %arg7: memref<64x128xf32, #tpu.memory_space<vmem>>) attributes {dimension_semantics = [#tpu.dimension_semantics<parallel>], iteration_bounds = array<i64: 1>, scalar_prefetch = 0 : i64, scratch_operands = 0 : i64, tpu.core_type = #tpu.core_type<tc>, window_params = [{transform_indices = @transform_0, window_bounds = array<i64: 64, 32>}, {pipeline_mode = #tpu.pipeline_mode<synchronous>, transform_indices = @transform_1, window_bounds = array<i64: 32, 128>}, {pipeline_mode = #tpu.pipeline_mode<synchronous>, transform_indices = @transform_2, window_bounds = array<i64: 1, 128>}, {pipeline_mode = #tpu.pipeline_mode<synchronous>, transform_indices = @transform_3, window_bounds = array<i64: 128, 128>}, {pipeline_mode = #tpu.pipeline_mode<synchronous>, transform_indices = @transform_4, window_bounds = array<i64: 1, 128>}, {pipeline_mode = #tpu.pipeline_mode<synchronous>, transform_indices = @transform_5, window_bounds = array<i64: 1, 128>}, {transform_indices = @transform_6, window_bounds = array<i64: 64, 128>}]} {
    %c0 = arith.constant 0 : index
    %c0_0 = arith.constant 0 : index
    %0 = vector.load %arg1[%c0, %c0_0] : memref<64x32xbf16, #tpu.memory_space<vmem>>, vector<64x32xbf16>
    %c0_1 = arith.constant 0 : index
    %c0_2 = arith.constant 0 : index
    %1 = vector.load %arg2[%c0_1, %c0_2] : memref<32x128xbf16, #tpu.memory_space<vmem>>, vector<32x128xbf16>
    %cst = arith.constant dense<0.000000e+00> : vector<64x128xf32>
    %2 = tpu.matmul %0, %1, %cst {dimension_numbers = #tpu.dot_dimension_numbers<[1], [0], [0], [1], [0, 0, 1, 1], [], []>} : vector<64x32xbf16>, vector<32x128xbf16>, vector<64x128xf32> -> vector<64x128xf32>
    %c0_3 = arith.constant 0 : index
    %c0_4 = arith.constant 0 : index
    %3 = vector.load %arg3[%c0_3, %c0_4] : memref<1x128xf32, #tpu.memory_space<vmem>>, vector<1x128xf32>
    %4 = vector.broadcast %3 : vector<1x128xf32> to vector<64x128xf32>
    %5 = arith.addf %2, %4 : vector<64x128xf32>
    %cst_5 = arith.constant 0.000000e+00 : f32
    %6 = vector.broadcast %cst_5 : f32 to vector<64x128xf32>
    %7 = arith.maximumf %5, %6 : vector<64x128xf32>
    %8 = arith.truncf %7 : vector<64x128xf32> to vector<64x128xbf16>
    %c0_6 = arith.constant 0 : index
    %c0_7 = arith.constant 0 : index
    %9 = vector.load %arg4[%c0_6, %c0_7] : memref<128x128xbf16, #tpu.memory_space<vmem>>, vector<128x128xbf16>
    %cst_8 = arith.constant dense<0.000000e+00> : vector<64x128xf32>
    %10 = tpu.matmul %8, %9, %cst_8 {dimension_numbers = #tpu.dot_dimension_numbers<[1], [0], [0], [1], [0, 0, 1, 1], [], []>} : vector<64x128xbf16>, vector<128x128xbf16>, vector<64x128xf32> -> vector<64x128xf32>
    %c0_9 = arith.constant 0 : index
    %c0_10 = arith.constant 0 : index
    %11 = vector.load %arg5[%c0_9, %c0_10] : memref<1x128xf32, #tpu.memory_space<vmem>>, vector<1x128xf32>
    %12 = vector.broadcast %11 : vector<1x128xf32> to vector<64x128xf32>
    %13 = arith.addf %10, %12 : vector<64x128xf32>
    %cst_11 = arith.constant 0.000000e+00 : f32
    %14 = vector.broadcast %cst_11 : f32 to vector<64x128xf32>
    %15 = arith.maximumf %13, %14 : vector<64x128xf32>
    %c0_12 = arith.constant 0 : index
    %c0_13 = arith.constant 0 : index
    %16 = vector.load %arg6[%c0_12, %c0_13] : memref<1x128xf32, #tpu.memory_space<vmem>>, vector<1x128xf32>
    %17 = vector.broadcast %16 : vector<1x128xf32> to vector<64x128xf32>
    %18 = arith.addf %15, %17 : vector<64x128xf32>
    %cst_14 = arith.constant dense<0xFF800000> : vector<64xf32>
    %19 = vector.multi_reduction <maximumf>, %18, %cst_14 [1] : vector<64x128xf32> to vector<64xf32>
    %20 = vector.shape_cast %19 : vector<64xf32> to vector<64x1xf32>
    %21 = vector.broadcast %20 : vector<64x1xf32> to vector<64x128xf32>
    %22 = arith.subf %18, %21 : vector<64x128xf32>
    %23 = math.exp %22 : vector<64x128xf32>
    %cst_15 = arith.constant dense<0.000000e+00> : vector<64xf32>
    %24 = vector.multi_reduction <add>, %23, %cst_15 [1] : vector<64x128xf32> to vector<64xf32>
    %25 = vector.shape_cast %24 : vector<64xf32> to vector<64x1xf32>
    %26 = math.log %25 : vector<64x1xf32>
    %27 = arith.addf %20, %26 : vector<64x1xf32>
    %28 = vector.broadcast %27 : vector<64x1xf32> to vector<64x128xf32>
    %29 = arith.subf %18, %28 : vector<64x128xf32>
    %c0_16 = arith.constant 0 : index
    %c0_17 = arith.constant 0 : index
    %30 = vector.load %arg7[%c0_16, %c0_17] : memref<64x128xf32, #tpu.memory_space<vmem>>, vector<64x128xf32>
    tpu.vector_store %arg7[%c0_16, %c0_17], %29 {strides = array<i32>} : memref<64x128xf32, #tpu.memory_space<vmem>>, vector<64x128xf32>,
    return
  }
  func.func @transform_0(%arg0: i32) -> (i32, i32) {
    %c0_i32 = arith.constant 0 : i32
    %c0_i32_0 = arith.constant 0 : i32
    return %arg0, %c0_i32 : i32, i32
  }
  func.func @transform_1(%arg0: i32) -> (i32, i32) {
    %c0_i32 = arith.constant 0 : i32
    %c0_i32_0 = arith.constant 0 : i32
    %c0_i32_1 = arith.constant 0 : i32
    return %c0_i32, %c0_i32_0 : i32, i32
  }
  func.func @transform_2(%arg0: i32) -> (i32, i32) {
    %c0_i32 = arith.constant 0 : i32
    %c0_i32_0 = arith.constant 0 : i32
    %c0_i32_1 = arith.constant 0 : i32
    return %c0_i32, %c0_i32_0 : i32, i32
  }
  func.func @transform_3(%arg0: i32) -> (i32, i32) {
    %c0_i32 = arith.constant 0 : i32
    %c0_i32_0 = arith.constant 0 : i32
    %c0_i32_1 = arith.constant 0 : i32
    return %c0_i32, %c0_i32_0 : i32, i32
  }
  func.func @transform_4(%arg0: i32) -> (i32, i32) {
    %c0_i32 = arith.constant 0 : i32
    %c0_i32_0 = arith.constant 0 : i32
    %c0_i32_1 = arith.constant 0 : i32
    return %c0_i32, %c0_i32_0 : i32, i32
  }
  func.func @transform_5(%arg0: i32) -> (i32, i32) {
    %c0_i32 = arith.constant 0 : i32
    %c0_i32_0 = arith.constant 0 : i32
    %c0_i32_1 = arith.constant 0 : i32
    return %c0_i32, %c0_i32_0 : i32, i32
  }
  func.func @transform_6(%arg0: i32) -> (i32, i32) {
    %c0_i32 = arith.constant 0 : i32
    %c0_i32_0 = arith.constant 0 : i32
    return %arg0, %c0_i32 : i32, i32
  }
}

</mosaic_0001>

<bundles_post_ra>
// kernel: tpu_custom_call.1
= control target key start
LH: loop header
LB: loop body
LE: loop exit
PB: predicated region body
PF: predicated region fallthrough
CT: control target
= control target key end

     0   :  { %11 = vsyncpa [#allocation3], 0  ;;  %s773_s0 = inlined_call_operand.vmem [shape: bf16[64,32], index: 0, kind: input, shape index: {}]   ;;  %s774_s1 = inlined_call_operand.vmem [shape: bf16[32,128], index: 1, kind: input, shape index: {}]   ;;  %s775_s2 = inlined_call_operand.vmem [shape: f32[1,128], index: 2, kind: input, shape index: {}]   ;;  %s776_s3 = inlined_call_operand.hbm [shape: bf16[128,128], index: 3, kind: input, shape index: {}]   ;;  %s777_s4 = inlined_call_operand.vmem [shape: f32[1,128], index: 4, kind: input, shape index: {}]   ;;  %s778_s5 = inlined_call_operand.vmem [shape: f32[1,128], index: 5, kind: input, shape index: {}]   ;;  %s779_s6 = inlined_call_operand.hbm [shape: f32[64,128], index: 6, kind: output, shape index: {}]  }
   0x1   :  { %12 = vsyncpa [#allocation4], 0  ;;  %s623_s21 = smov [#allocation2]  }
   0x2   :  { %s24_s22 = sshll.u32 %s623_s21, 4  ;;  %s25_s22 = int_to_ptr.vmem [resolvable:$true] %s24_s22 }
   0x3   :  { %s587_s23 = scalar_lea.vmem %s25_s22, 1024  ;;  %p592_p1 = scmp.lt.s32.totalorder %s25_s22, %s25_s22 }
   0x4   :  { %p588_p0 = scmp.ne.s32.totalorder %s25_s22, %s587_s23  ;;  %p593_p2 = scmp.lt.s32.totalorder %s587_s23, %s587_s23 }
   0x6   :  { %p594_p3 = por %p593_p2, %p592_p1 }
   0x8   :  { %p595_p4 = pnand %p594_p3, %p588_p0 }
   0xa   :  { %598 = shalt.err (!%p595_p4)
}
   0xb   :  { %s624_s24 = smov 64   ;;  %s625_s25 = smov 4  }
   0xc   :  { %30 = dma.hbm_to_vmem [thread:$0]  %s776_s3, 1024, %s25_s22, [#allocation3], %s624_s24, %s624_s24, %s625_s25  }
   0xd   :  { %619 = dma.done.wait [#allocation3], 1024  }
   0xe   :  { %620 = vsyncadd [#allocation3], 4294966272  ;;  %v533_v0 = vld [vmem:[%s774_s1 + $0x8] sm:$0xff]   ;;  %v534_v1 = vld [vmem:[%s774_s1] sm:$0xff]   ;;  %vm90_vm0 = vcmask 261120  }
   0xf   :  { %491 = vmatprep.subr.bf16.mxu0 %v533_v0  ;;  %v535_v2 = vld [vmem:[%s773_s0] sm:$0xff]   ;;  %v536_v3 = vld [vmem:[%s773_s0 + $0x8] sm:$0xff]   ;;  %v537_v4 = vld [vmem:[%s773_s0 + $0x10] sm:$0xff]  }
  0x10   :  { %492 = vmatpush3.bf16.msra.mxu0 %v533_v0  ;;  %495 = vmatprep.mubr.msk.bf16.mxu0 %vm90_vm0, %v535_v2  ;;  %v539_v5 = vld [vmem:[#allocation2 + $0x38] sm:$0xff]   ;;  %v540_v6 = vld [vmem:[#allocation2 + $0x30] sm:$0xff]   ;;  %v541_v7 = vld [vmem:[#allocation2 + $0x28] sm:$0xff]  }
  0x11   :  { %493 = vmatprep.subr.bf16.mxu0 %v534_v1  ;;  %503 = vmatprep.subr.bf16.mxu1 %v539_v5  ;;  %v538_v8 = vld [vmem:[%s773_s0 + $0x18] sm:$0xff]   ;;  %v542_v9 = vld [vmem:[#allocation2 + $0x20] sm:$0xff]   ;;  %v544_v11 = vld [vmem:[#allocation2 + $0x10] sm:$0xff]  }
  0x12   :  { %504 = vmatpush3.bf16.msra.mxu1 %v539_v5  ;;  %v543_v10 = vld [vmem:[#allocation2 + $0x18] sm:$0xff]   ;;  %v545_v12 = vld [vmem:[#allocation2 + $0x8] sm:$0xff]   ;;  %v546_v13 = vld [vmem:[#allocation2] sm:$0xff]  }
  0x13   :  { %505 = vmatprep.subr.bf16.mxu1 %v540_v6  ;;  %v452_v16 = vld [vmem:[%s775_s2] ss:$0 sm:$0xff] }
  0x14   :  { %494 = vmatpush3.bf16.msra.mxu0 %v534_v1  ;;  %v463_v43 = vld [vmem:[%s777_s4] ss:$0 sm:$0xff]  ;;  %s626_s4 = smov [#allocation5]  }
  0x15   :  { %v472_v46 = vld [vmem:[%s778_s5] ss:$0 sm:$0xff]  ;;  %s440_s5 = sshll.u32 %s626_s4, 4  ;;  %s441_s5 = int_to_ptr.vmem [resolvable:$true] %s440_s5 }
  0x16   :  { %506 = vmatpush3.bf16.msra.mxu1 %v540_v6  ;;  %s599_s18 = scalar_lea.vmem %s441_s5, 1024  ;;  %p604_p6 = scmp.lt.s32.totalorder %s441_s5, %s441_s5 }
  0x17   :  { %496 = vmatmul.mubr.msk.bf16.vlgmr.msra.gmra.mxu0 %vm90_vm0, %v536_v3  ;;  %507 = vmatprep.subr.bf16.mxu1 %v541_v7  ;;  %p600_p5 = scmp.ne.s32.totalorder %s441_s5, %s599_s18  ;;  %p605_p7 = scmp.lt.s32.totalorder %s599_s18, %s599_s18 }
  0x18   :  { %499 = vmatprep.mubr.msk.bf16.mxu0 %vm90_vm0, %v537_v4 }
  0x19   :  { %p606_p8 = por %p605_p7, %p604_p6 }
  0x1a   :  { %508 = vmatpush3.bf16.msra.mxu1 %v541_v7 }
  0x1b   :  { %509 = vmatprep.subr.bf16.mxu1 %v542_v9  ;;  %p607_p9 = pnand %p606_p8, %p600_p5 }
  0x1e   :  { %510 = vmatpush3.bf16.msra.mxu1 %v542_v9 }
  0x1f   :  { %500 = vmatmul.mubr.msk.bf16.gmra.mxu0 %vm90_vm0, %v538_v8  ;;  %511 = vmatprep.subr.bf16.mxu1 %v543_v10 }
  0x22   :  { %512 = vmatpush3.bf16.msra.mxu1 %v543_v10 }
  0x23   :  { %513 = vmatprep.subr.bf16.mxu1 %v544_v11 }
  0x26   :  { %514 = vmatpush3.bf16.msra.mxu1 %v544_v11 }
  0x27   :  { %515 = vmatprep.subr.bf16.mxu1 %v545_v12 }
  0x2a   :  { %516 = vmatpush3.bf16.msra.mxu1 %v545_v12 }
  0x2b   :  { %517 = vmatprep.subr.bf16.mxu1 %v546_v13 }
  0x2e   :  { %518 = vmatpush3.bf16.msra.mxu1 %v546_v13 }
  0xd7   :  { %v497_v14 = vpop.f32.mrf.mxu0 }
  0xd8   :  { %v146_v20 = vadd.f32 %v497_v14, %v452_v16 }
  0xd9   :  { %v137_v15 = vpop.f32.mrf.mxu0 }
  0xda   :  { %v138_v18 = vadd.f32 %v452_v16, %v137_v15  ;;  %v170_v27 = vmax.f32 %v146_v20, 0.0 }
  0xdb   :  { %v498_v17 = vpop.f32.mrf.mxu0 }
  0xdc   :  { %v149_v19 = vadd.f32 %v498_v17, %v452_v16  ;;  %v168_v25 = vmax.f32 %v138_v18, 0.0 }
  0xdd   :  { %v140_v21 = vpop.f32.mrf.mxu0 }
  0xde   :  { %v141_v22 = vadd.f32 %v452_v16, %v140_v21  ;;  %v171_v23 = vmax.f32 %v149_v19, 0.0 }
  0xdf   :  { %v501_v24 = vpop.f32.mrf.mxu0 }
  0xe0   :  { %v169_v26 = vmax.f32 %v141_v22, 0.0  ;;  %v177_v30 = vpack.c.bf16 %v171_v23, %v170_v27  ;;  %v162_v34 = vadd.f32 %v501_v24, %v452_v16 }
  0xe1   :  { %v153_v28 = vpop.f32.mrf.mxu0 }
  0xe2   :  { %v176_v29 = vpack.c.bf16 %v169_v26, %v168_v25  ;;  %v154_v32 = vadd.f32 %v452_v16, %v153_v28  ;;  %v174_v40 = vmax.f32 %v162_v34, 0.0 }
  0xe3   :  { %v502_v31 = vpop.f32.mrf.mxu0 }
  0xe4   :  { %v165_v33 = vadd.f32 %v502_v31, %v452_v16  ;;  %519 = vmatprep.mubr.bf16.mxu1 %v176_v29  ;;  %v172_v38 = vmax.f32 %v154_v32, 0.0 }
  0xe5   :  { %v156_v35 = vpop.f32.mrf.mxu0  ;;  %520 = vmatmul.mubr.bf16.vlgmr.msra.gmra.mxu1 %v177_v30 }
  0xe6   :  { %v157_v36 = vadd.f32 %v452_v16, %v156_v35  ;;  %v175_v37 = vmax.f32 %v165_v33, 0.0 }
  0xe8   :  { %v173_v39 = vmax.f32 %v157_v36, 0.0  ;;  %v179_v42 = vpack.c.bf16 %v175_v37, %v174_v40 }
  0xea   :  { %v178_v41 = vpack.c.bf16 %v173_v39, %v172_v38 }
  0xec   :  { %523 = vmatprep.mubr.bf16.mxu1 %v178_v41 }
  0xed   :  { %524 = vmatmul.mubr.bf16.gmra.mxu1 %v179_v42 }
 0x1a5   :  { %v521_v44 = vpop.f32.mrf.mxu1 }
 0x1a6   :  { %v294_v45 = vadd.f32 %v521_v44, %v463_v43 }
 0x1a7   :  { %v285_v47 = vpop.f32.mrf.mxu1 }
 0x1a8   :  { %v318_v48 = vmax.f32 %v294_v45, 0.0  ;;  %v286_v49 = vadd.f32 %v463_v43, %v285_v47 }
 0x1a9   :  { %v522_v50 = vpop.f32.mrf.mxu1 }
 0x1aa   :  { %v698_v51 = vadd.f32 %v472_v46, %v318_v48  ;;  %v316_v52 = vmax.f32 %v286_v49, 0.0  ;;  %v297_v53 = vadd.f32 %v522_v50, %v463_v43 }
 0x1ab   :  { %v288_v54 = vpop.f32.mrf.mxu1 }
 0x1ac   :  { %v700_v55 = vadd.f32 %v472_v46, %v316_v52  ;;  %v319_v56 = vmax.f32 %v297_v53, 0.0  ;;  %v289_v57 = vadd.f32 %v463_v43, %v288_v54  ;;  %343 = vmax.xlane.f32.xlu1 %v698_v51 }
 0x1ad   :  { %v525_v58 = vpop.f32.mrf.mxu1 }
 0x1ae   :  { %v703_v59 = vadd.f32 %v472_v46, %v319_v56  ;;  %v317_v60 = vmax.f32 %v289_v57, 0.0  ;;  %339 = vmax.xlane.f32.xlu0 %v700_v55  ;;  %v310_v63 = vadd.f32 %v525_v58, %v463_v43 }
 0x1af   :  { %v301_v61 = vpop.f32.mrf.mxu1 }
 0x1b0   :  { %v706_v62 = vadd.f32 %v472_v46, %v317_v60  ;;  %v302_v0 = vadd.f32 %v463_v43, %v301_v61  ;;  %345 = vmax.xlane.f32.xlu1 %v703_v59  ;;  %v322_v4 = vmax.f32 %v310_v63, 0.0 }
 0x1b1   :  { %v526_v1 = vpop.f32.mrf.mxu1 }
 0x1b2   :  { %v320_v2 = vmax.f32 %v302_v0, 0.0  ;;  %341 = vmax.xlane.f32.xlu0 %v706_v62  ;;  %v313_v6 = vadd.f32 %v526_v1, %v463_v43  ;;  %v713_v9 = vadd.f32 %v472_v46, %v322_v4 }
 0x1b3   :  { %v304_v3 = vpop.f32.mrf.mxu1 }
 0x1b4   :  { %v710_v5 = vadd.f32 %v472_v46, %v320_v2  ;;  %v305_v7 = vadd.f32 %v463_v43, %v304_v3  ;;  %v323_v10 = vmax.f32 %v313_v6, 0.0 }
 0x1b6   :  { %v321_v8 = vmax.f32 %v305_v7, 0.0  ;;  %347 = vmax.xlane.f32.xlu0 %v710_v5  ;;  %v719_v12 = vadd.f32 %v472_v46, %v323_v10 }
 0x1b8   :  { %v715_v11 = vadd.f32 %v472_v46, %v321_v8 }
 0x1ba   :  { %349 = vmax.xlane.f32.xlu1 %v715_v11  ;;  %351 = vmax.xlane.f32.xlu0 %v713_v9 }
 0x1be   :  { %353 = vmax.xlane.f32.xlu1 %v719_v12 }
 0x235   :  { %v722_v13 = vpop.xlane.xlu1 %343 }
 0x236   :  { %v357_v14 = vsub.f32 %v698_v51, %v722_v13 }
 0x237   :  { %v726_v15 = vpop.xlane.xlu0 %339 }
 0x238   :  { %v367_v16 = vmul.f32 1.442695, %v357_v14  ;;  %v355_v17 = vsub.f32 %v700_v55, %v726_v15 }
 0x239   :  { %v730_v18 = vpop.xlane.xlu1 %345 }
 0x23a   :  { %547 = vpow2.f32 %v367_v16  ;;  %v363_v19 = vmul.f32 1.442695, %v355_v17  ;;  %v358_v20 = vsub.f32 %v703_v59, %v730_v18 }
 0x23b   :  { %v734_v21 = vpop.xlane.xlu0 %341 }
 0x23c   :  { %v369_v22 = vmul.f32 1.442695, %v358_v20  ;;  %v356_v23 = vsub.f32 %v706_v62, %v734_v21  ;;  %549 = vpow2.f32 %v363_v19 }
 0x23e   :  { %551 = vpow2.f32 %v369_v22  ;;  %v365_v24 = vmul.f32 1.442695, %v356_v23 }
 0x23f   :  { %v738_v25 = vpop.xlane.xlu0 %347 }
 0x240   :  { %v359_v26 = vsub.f32 %v710_v5, %v738_v25  ;;  %553 = vpow2.f32 %v365_v24 }
 0x242   :  { %v371_v27 = vmul.f32 1.442695, %v359_v26 }
 0x243   :  { %v742_v28 = vpop.xlane.xlu1 %349  ;;  %v744_v29 = vpop.xlane.xlu0 %351 }
 0x244   :  { %555 = vpow2.f32 %v371_v27  ;;  %v360_v30 = vsub.f32 %v715_v11, %v742_v28  ;;  %v361_v31 = vsub.f32 %v713_v9, %v744_v29 }
 0x246   :  { %v373_v32 = vmul.f32 1.442695, %v360_v30  ;;  %v375_v33 = vmul.f32 1.442695, %v361_v31 }
 0x247   :  { %v548_v34 = vpop.eup %547  ;;  %v750_v35 = vpop.xlane.xlu1 %353 }
 0x248   :  { %557 = vpow2.f32 %v373_v32  ;;  %v362_v36 = vsub.f32 %v719_v12, %v750_v35  ;;  %383 = vadd.xlane.f32.xlu0 %v548_v34 }
 0x249   :  { %559 = vpow2.f32 %v375_v33  ;;  %v550_v37 = vpop.eup %549 }
 0x24a   :  { %v377_v38 = vmul.f32 1.442695, %v362_v36 }
 0x24b   :  { %v552_v39 = vpop.eup %551 }
 0x24c   :  { %561 = vpow2.f32 %v377_v38  ;;  %385 = vadd.xlane.f32.xlu1 %v552_v39  ;;  %379 = vadd.xlane.f32.xlu0 %v550_v37 }
 0x24d   :  { %v554_v40 = vpop.eup %553 }
 0x250   :  { %381 = vadd.xlane.f32.xlu1 %v554_v40 }
 0x251   :  { %v556_v41 = vpop.eup %555 }
 0x252   :  { %387 = vadd.xlane.f32.xlu0 %v556_v41 }
 0x255   :  { %v558_v42 = vpop.eup %557 }
 0x256   :  { %v560_v43 = vpop.eup %559  ;;  %389 = vadd.xlane.f32.xlu1 %v558_v42 }
 0x257   :  { %391 = vadd.xlane.f32.xlu0 %v560_v43 }
 0x259   :  { %v562_v44 = vpop.eup %561 }
 0x25a   :  { %393 = vadd.xlane.f32.xlu1 %v562_v44 }
 0x2d1   :  { %v384_v45 = vpop.xlane.xlu0 %383 }
 0x2d2   :  { %563 = vlog2.f32 %v384_v45 }
 0x2d5   :  { %v386_v46 = vpop.xlane.xlu1 %385  ;;  %v380_v47 = vpop.xlane.xlu0 %379 }
 0x2d6   :  { %565 = vlog2.f32 %v386_v46 }
 0x2d7   :  { %567 = vlog2.f32 %v380_v47 }
 0x2d9   :  { %v382_v48 = vpop.xlane.xlu1 %381 }
 0x2da   :  { %569 = vlog2.f32 %v382_v48 }
 0x2db   :  { %v388_v49 = vpop.xlane.xlu0 %387 }
 0x2dc   :  { %571 = vlog2.f32 %v388_v49 }
 0x2df   :  { %v564_v50 = vpop.eup %563  ;;  %v390_v52 = vpop.xlane.xlu1 %389 }
 0x2e0   :  { %v400_v53 = vmul.f32 0.6931472, %v564_v50  ;;  %573 = vlog2.f32 %v390_v52  ;;  %v392_v54 = vpop.xlane.xlu0 %391 }
 0x2e1   :  { %575 = vlog2.f32 %v392_v54 }
 0x2e2   :  { %v413_v56 = vadd.f32 %v400_v53, %v722_v13 }
 0x2e3   :  { %v566_v57 = vpop.eup %565  ;;  %v394_v58 = vpop.xlane.xlu1 %393 }
 0x2e4   :  { %v568_v60 = vpop.eup %567  ;;  %v421_v61 = vsub.f32 %v698_v51, %v413_v56  ;;  %v402_v63 = vmul.f32 0.6931472, %v566_v57  ;;  %577 = vlog2.f32 %v394_v58 }
 0x2e5   :  { %v396_v0 = vmul.f32 0.6931472, %v568_v60 }
 0x2e6   :  { %429 = vst [vmem:[#allocation5 + $0x10] sm:$0xff] %v421_v61  ;;  %v414_v1 = vadd.f32 %v402_v63, %v730_v18 }
 0x2e7   :  { %v570_v2 = vpop.eup %569  ;;  %v411_v3 = vadd.f32 %v396_v0, %v726_v15 }
 0x2e8   :  { %v422_v4 = vsub.f32 %v703_v59, %v414_v1  ;;  %v398_v6 = vmul.f32 0.6931472, %v570_v2 }
 0x2e9   :  { %v572_v7 = vpop.eup %571  ;;  %v419_v8 = vsub.f32 %v700_v55, %v411_v3 }
 0x2ea   :  { %430 = vst [vmem:[#allocation5 + $0x18] sm:$0xff] %v422_v4  ;;  %v412_v10 = vadd.f32 %v398_v6, %v734_v21  ;;  %v404_v13 = vmul.f32 0.6931472, %v572_v7 }
 0x2eb   :  { %427 = vst [vmem:[#allocation5] sm:$0xff] %v419_v8 }
 0x2ec   :  { %v420_v51 = vsub.f32 %v706_v62, %v412_v10  ;;  %v415_v14 = vadd.f32 %v404_v13, %v738_v25 }
 0x2ed   :  { %v574_v16 = vpop.eup %573 }
 0x2ee   :  { %v576_v17 = vpop.eup %575  ;;  %428 = vst [vmem:[#allocation5 + $0x8] sm:$0xff] %v420_v51  ;;  %v423_v15 = vsub.f32 %v710_v5, %v415_v14  ;;  %v406_v18 = vmul.f32 0.6931472, %v574_v16 }
 0x2ef   :  { %v408_v59 = vmul.f32 0.6931472, %v576_v17 }
 0x2f0   :  { %431 = vst [vmem:[#allocation5 + $0x20] sm:$0xff] %v423_v15  ;;  %v416_v19 = vadd.f32 %v406_v18, %v742_v28 }
 0x2f1   :  { %v578_v55 = vpop.eup %577  ;;  %v417_v20 = vadd.f32 %v408_v59, %v744_v29 }
 0x2f2   :  { %v424_v21 = vsub.f32 %v715_v11, %v416_v19  ;;  %v410_v22 = vmul.f32 0.6931472, %v578_v55 }
 0x2f3   :  { %v425_v62 = vsub.f32 %v713_v9, %v417_v20 }
 0x2f4   :  { %432 = vst [vmem:[#allocation5 + $0x28] sm:$0xff] %v424_v21  ;;  %v418_v23 = vadd.f32 %v410_v22, %v750_v35 }
 0x2f5   :  { %433 = vst [vmem:[#allocation5 + $0x30] sm:$0xff] %v425_v62 }
 0x2f6   :  { %v426_v5 = vsub.f32 %v719_v12, %v418_v23 }
 0x2f8   :  { %434 = vst [vmem:[#allocation5 + $0x38] sm:$0xff] %v426_v5 }
 0x2f9   :  { %610 = shalt.err (!%p607_p9)
}
 0x2fa   :  { %s627_s19 = smov 128   ;;  %s628_s20 = smov 8  }
 0x2fb   :  { %446 = dma.vmem_to_hbm [thread:$0]  %s441_s5, 1024, %s779_s6, [#allocation4], %s627_s19, %s627_s19, %s628_s20  }
 0x2fc   :  { %621 = dma.done.wait [#allocation4], 1024  }
 0x2fd   :  { %622 = vsyncadd [#allocation4], 4294966272 }
 0x2fe   :  { %450 = vsyncpa [#allocation3], 1 }
 0x2ff   :  { %451 = vsyncpa [#allocation4], 1 }

</bundles_post_ra>
